<compile_context>
chip_gen: v6e
topology: v6e:2x2x1
jax: 0.10.0
libtpu: 0.0.40
codegen_flags: <defaults>
</compile_context>

<pallas_src>
import jax
import jax.numpy as jnp
from jax.experimental import pallas as pl
from jax.experimental.pallas import tpu as pltpu


# --------------------------------------------------------------------------
# Fused RGCN-layer + ReLU kernel
# --------------------------------------------------------------------------
def _rgcn_relu_kernel(x_all_ref,   # (N, D)        full x   (message sources)
                      x_blk_ref,   # (Bn, D)       x rows of this output block (root term)
                      w_root_ref,  # (D, D)
                      w_rel_ref,   # (1, D, D)     W_rel[r]
                      a_ref,       # (1, Bn, N)    A_norm[r] rows of this block
                      b_ref,       # (1, D)        bias
                      o_ref,       # (Bn, D)       output block
                      acc_ref):    # (Bn, D) f32   VMEM accumulator
    r = pl.program_id(1)

    @pl.when(r == 0)
    def _init():
        acc_ref[...] = (
            jnp.dot(x_blk_ref[...], w_root_ref[...],
                    preferred_element_type=jnp.float32)
            + b_ref[...]
        )

    # Per-relation message transform + normalized aggregation (both on MXU).
    h = jnp.dot(x_all_ref[...], w_rel_ref[0],
                preferred_element_type=jnp.float32)
    acc_ref[...] += jnp.dot(a_ref[0], h, preferred_element_type=jnp.float32)

    @pl.when(r == pl.num_programs(1) - 1)
    def _finalize():
        # Fused ReLU (scalar constant, no broadcast-zero tile).
        o_ref[...] = jnp.maximum(acc_ref[...], 0.0).astype(o_ref.dtype)


def rgcn_relu_layer(x, a_norm, w_root, w_rel, bias, *, block_n=None):
    """One RGCNConv layer followed by ReLU, as a single pallas_call."""
    n, d = x.shape
    num_rels = w_rel.shape[0]
    if block_n is None:
        block_n = n if n <= 512 else 256   # full-extent for small graphs
    bias2d = bias.reshape(1, d)

    grid = (pl.cdiv(n, block_n), num_rels)   # node rows parallel, relations = reduction (last)

    return pl.pallas_call(
        _rgcn_relu_kernel,
        out_shape=jax.ShapeDtypeStruct((n, d), x.dtype),
        grid=grid,
        in_specs=[
            pl.BlockSpec((n, d), lambda i, r: (0, 0)),            # x (full, resident)
            pl.BlockSpec((block_n, d), lambda i, r: (i, 0)),      # x rows for root term
            pl.BlockSpec((d, d), lambda i, r: (0, 0)),            # W_root
            pl.BlockSpec((1, d, d), lambda i, r: (r, 0, 0)),      # W_rel[r]
            pl.BlockSpec((1, block_n, n), lambda i, r: (r, i, 0)),# A_norm[r] rows
            pl.BlockSpec((1, d), lambda i, r: (0, 0)),            # bias
        ],
        out_specs=pl.BlockSpec((block_n, d), lambda i, r: (i, 0)),
        scratch_shapes=[pltpu.VMEM((block_n, d), jnp.float32)],
        compiler_params=pltpu.CompilerParams(
            dimension_semantics=("parallel", "arbitrary")),
    )(x, x, w_root, w_rel, a_norm, bias2d)


# --------------------------------------------------------------------------
# Graph preprocessing (plain JAX: data-dependent scatter)
# --------------------------------------------------------------------------
def build_rel_adjacency(edge_index, edge_type, num_nodes, num_rels):
    """A_norm[r, i, j] = 1/|N_r(i)| for each edge j->i of relation r (PyG mean aggr)."""
    src = edge_index[0]
    dst = edge_index[1]
    adj = jnp.zeros((num_rels, num_nodes, num_nodes), jnp.float32)
    adj = adj.at[edge_type, dst, src].add(1.0)
    deg = adj.sum(axis=-1, keepdims=True)
    return adj / jnp.maximum(deg, 1.0)


# --------------------------------------------------------------------------
# Net.forward equivalent
# --------------------------------------------------------------------------
def net_forward(x, edge_index, edge_type, params1, params2):
    num_nodes = x.shape[0]
    num_rels = params1["w_rel"].shape[0]
    a_norm = build_rel_adjacency(edge_index, edge_type, num_nodes, num_rels)

    h = rgcn_relu_layer(x, a_norm,
                        params1["w_root"], params1["w_rel"], params1["bias"])
    # nn.Dropout in eval mode is identity.
    # TODO(synk): training-mode dropout not implemented.
    out = rgcn_relu_layer(h, a_norm,
                          params2["w_root"], params2["w_rel"], params2["bias"])
    return out


# --------------------------------------------------------------------------
# Pure-JAX reference (for correctness check)
# --------------------------------------------------------------------------
def rgcn_relu_ref(x, a_norm, w_root, w_rel, bias):
    xw = jnp.einsum("md,rdo->rmo", x, w_rel)
    msg = jnp.einsum("rnm,rmo->no", a_norm, xw)
    return jnp.maximum(x @ w_root + msg + bias, 0.0)


def init_rgcn_params(key, d, num_rels, scale=0.05):
    k1, k2, k3 = jax.random.split(key, 3)
    return dict(
        w_root=scale * jax.random.normal(k1, (d, d), jnp.float32),
        w_rel=scale * jax.random.normal(k2, (num_rels, d, d), jnp.float32),
        bias=scale * jax.random.normal(k3, (d,), jnp.float32),
    )


if __name__ == "__main__":
    key = jax.random.PRNGKey(0)
    kx, ke, kt, kw1, kw2 = jax.random.split(key, 5)

    # Small shapes consistent with Net: node_emb_dim=128 (lane-dense), num_rels=4.
    num_nodes, hidden, num_rels, num_edges = 16, 128, 4, 48

    x = jax.random.normal(kx, (num_nodes, hidden), dtype=jnp.float32)
    edge_index = jax.random.randint(ke, (2, num_edges), 0, num_nodes, dtype=jnp.int32)
    edge_type = jax.random.randint(kt, (num_edges,), 0, num_rels, dtype=jnp.int32)

    params1 = init_rgcn_params(kw1, hidden, num_rels)
    params2 = init_rgcn_params(kw2, hidden, num_rels)

    out = net_forward(x, edge_index, edge_type, params1, params2)
    out = jax.block_until_ready(out)

    # Reference (same math in plain JAX).
    a_norm = build_rel_adjacency(edge_index, edge_type, num_nodes, num_rels)
    h_ref = rgcn_relu_ref(x, a_norm, params1["w_root"], params1["w_rel"], params1["bias"])
    ref = rgcn_relu_ref(h_ref, a_norm, params2["w_root"], params2["w_rel"], params2["bias"])

    assert out.shape == (num_nodes, hidden) and out.dtype == jnp.float32
    assert jnp.allclose(out, ref, rtol=1e-2, atol=1e-2), float(jnp.max(jnp.abs(out - ref)))

    print("KERNEL_OK")
</pallas_src>

<mosaic_0001>
module attributes {stable_mosaic.version = 11 : i64} {
  func.func @_rgcn_relu_kernel(%arg0: i32, %arg1: i32, %arg2: memref<16x128xf32, #tpu.memory_space<vmem>>, %arg3: memref<16x128xf32, #tpu.memory_space<vmem>>, %arg4: memref<128x128xf32, #tpu.memory_space<vmem>>, %arg5: memref<1x128x128xf32, #tpu.memory_space<vmem>>, %arg6: memref<1x16x16xf32, #tpu.memory_space<vmem>>, %arg7: memref<1x128xf32, #tpu.memory_space<vmem>>, %arg8: memref<16x128xf32, #tpu.memory_space<vmem>>, %arg9: memref<16x128xf32, #tpu.memory_space<vmem>>) attributes {dimension_semantics = [#tpu.dimension_semantics<parallel>, #tpu.dimension_semantics<arbitrary>], iteration_bounds = array<i64: 1, 4>, scalar_prefetch = 0 : i64, scratch_operands = 1 : i64, tpu.core_type = #tpu.core_type<tc>, window_params = [{pipeline_mode = #tpu.pipeline_mode<synchronous>, transform_indices = @transform_0, window_bounds = array<i64: 16, 128>}, {transform_indices = @transform_1, window_bounds = array<i64: 16, 128>}, {pipeline_mode = #tpu.pipeline_mode<synchronous>, transform_indices = @transform_2, window_bounds = array<i64: 128, 128>}, {transform_indices = @transform_3, window_bounds = array<i64: 1, 128, 128>}, {transform_indices = @transform_4, window_bounds = array<i64: 1, 16, 16>}, {pipeline_mode = #tpu.pipeline_mode<synchronous>, transform_indices = @transform_5, window_bounds = array<i64: 1, 128>}, {transform_indices = @transform_6, window_bounds = array<i64: 16, 128>}]} {
    %c0_i32 = arith.constant 0 : i32
    %0 = arith.cmpi eq, %arg1, %c0_i32 : i32
    %1 = arith.extui %0 : i1 to i32
    %c0_i32_0 = arith.constant 0 : i32
    %2 = arith.cmpi ne, %1, %c0_i32_0 : i32
    scf.if %2 {
      %c0_14 = arith.constant 0 : index
      %c0_15 = arith.constant 0 : index
      %16 = vector.load %arg3[%c0_14, %c0_15] : memref<16x128xf32, #tpu.memory_space<vmem>>, vector<16x128xf32>
      %c0_16 = arith.constant 0 : index
      %c0_17 = arith.constant 0 : index
      %17 = vector.load %arg4[%c0_16, %c0_17] : memref<128x128xf32, #tpu.memory_space<vmem>>, vector<128x128xf32>
      %cst_18 = arith.constant dense<0.000000e+00> : vector<16x128xf32>
      %18 = tpu.matmul %16, %17, %cst_18 {dimension_numbers = #tpu.dot_dimension_numbers<[1], [0], [0], [1], [0, 0, 1, 1], [], []>} : vector<16x128xf32>, vector<128x128xf32>, vector<16x128xf32> -> vector<16x128xf32>
      %c0_19 = arith.constant 0 : index
      %c0_20 = arith.constant 0 : index
      %19 = vector.load %arg7[%c0_19, %c0_20] : memref<1x128xf32, #tpu.memory_space<vmem>>, vector<1x128xf32>
      %20 = vector.broadcast %19 : vector<1x128xf32> to vector<16x128xf32>
      %21 = arith.addf %18, %20 : vector<16x128xf32>
      %c0_21 = arith.constant 0 : index
      %c0_22 = arith.constant 0 : index
      %22 = vector.load %arg9[%c0_21, %c0_22] : memref<16x128xf32, #tpu.memory_space<vmem>>, vector<16x128xf32>
      tpu.vector_store %arg9[%c0_21, %c0_22], %21 {strides = array<i32>} : memref<16x128xf32, #tpu.memory_space<vmem>>, vector<16x128xf32>,
    } else {
    }
    %c0 = arith.constant 0 : index
    %c0_1 = arith.constant 0 : index
    %3 = vector.load %arg2[%c0, %c0_1] : memref<16x128xf32, #tpu.memory_space<vmem>>, vector<16x128xf32>
    %c0_2 = arith.constant 0 : index
    %c0_3 = arith.constant 0 : index
    %c0_4 = arith.constant 0 : index
    %4 = vector.load %arg5[%c0_2, %c0_3, %c0_4] : memref<1x128x128xf32, #tpu.memory_space<vmem>>, vector<1x128x128xf32>
    %5 = vector.shape_cast %4 : vector<1x128x128xf32> to vector<128x128xf32>
    %cst = arith.constant dense<0.000000e+00> : vector<16x128xf32>
    %6 = tpu.matmul %3, %5, %cst {dimension_numbers = #tpu.dot_dimension_numbers<[1], [0], [0], [1], [0, 0, 1, 1], [], []>} : vector<16x128xf32>, vector<128x128xf32>, vector<16x128xf32> -> vector<16x128xf32>
    %c0_5 = arith.constant 0 : index
    %c0_6 = arith.constant 0 : index
    %7 = vector.load %arg9[%c0_5, %c0_6] : memref<16x128xf32, #tpu.memory_space<vmem>>, vector<16x128xf32>
    %c0_7 = arith.constant 0 : index
    %c0_8 = arith.constant 0 : index
    %c0_9 = arith.constant 0 : index
    %8 = vector.load %arg6[%c0_7, %c0_8, %c0_9] : memref<1x16x16xf32, #tpu.memory_space<vmem>>, vector<1x16x16xf32>
    %9 = vector.shape_cast %8 : vector<1x16x16xf32> to vector<16x16xf32>
    %cst_10 = arith.constant dense<0.000000e+00> : vector<16x128xf32>
    %10 = tpu.matmul %9, %6, %cst_10 {dimension_numbers = #tpu.dot_dimension_numbers<[1], [0], [0], [1], [0, 0, 1, 1], [], []>} : vector<16x16xf32>, vector<16x128xf32>, vector<16x128xf32> -> vector<16x128xf32>
    %11 = arith.addf %7, %10 : vector<16x128xf32>
    %c0_11 = arith.constant 0 : index
    %c0_12 = arith.constant 0 : index
    %12 = vector.load %arg9[%c0_11, %c0_12] : memref<16x128xf32, #tpu.memory_space<vmem>>, vector<16x128xf32>
    tpu.vector_store %arg9[%c0_11, %c0_12], %11 {strides = array<i32>} : memref<16x128xf32, #tpu.memory_space<vmem>>, vector<16x128xf32>,
    %c3_i32 = arith.constant 3 : i32
    %13 = arith.cmpi eq, %arg1, %c3_i32 : i32
    %14 = arith.extui %13 : i1 to i32
    %c0_i32_13 = arith.constant 0 : i32
    %15 = arith.cmpi ne, %14, %c0_i32_13 : i32
    scf.if %15 {
      %c0_14 = arith.constant 0 : index
      %c0_15 = arith.constant 0 : index
      %16 = vector.load %arg9[%c0_14, %c0_15] : memref<16x128xf32, #tpu.memory_space<vmem>>, vector<16x128xf32>
      %cst_16 = arith.constant 0.000000e+00 : f32
      %17 = vector.broadcast %cst_16 : f32 to vector<16x128xf32>
      %18 = arith.maximumf %16, %17 : vector<16x128xf32>
      %c0_17 = arith.constant 0 : index
      %c0_18 = arith.constant 0 : index
      %19 = vector.load %arg8[%c0_17, %c0_18] : memref<16x128xf32, #tpu.memory_space<vmem>>, vector<16x128xf32>
      tpu.vector_store %arg8[%c0_17, %c0_18], %18 {strides = array<i32>} : memref<16x128xf32, #tpu.memory_space<vmem>>, vector<16x128xf32>,
    } else {
    }
    return
  }
  func.func @transform_0(%arg0: i32, %arg1: i32) -> (i32, i32) {
    %c0_i32 = arith.constant 0 : i32
    %c0_i32_0 = arith.constant 0 : i32
    %c0_i32_1 = arith.constant 0 : i32
    return %c0_i32, %c0_i32_0 : i32, i32
  }
  func.func @transform_1(%arg0: i32, %arg1: i32) -> (i32, i32) {
    %c0_i32 = arith.constant 0 : i32
    %c0_i32_0 = arith.constant 0 : i32
    return %arg0, %c0_i32 : i32, i32
  }
  func.func @transform_2(%arg0: i32, %arg1: i32) -> (i32, i32) {
    %c0_i32 = arith.constant 0 : i32
    %c0_i32_0 = arith.constant 0 : i32
    %c0_i32_1 = arith.constant 0 : i32
    return %c0_i32, %c0_i32_0 : i32, i32
  }
  func.func @transform_3(%arg0: i32, %arg1: i32) -> (i32, i32, i32) {
    %c0_i32 = arith.constant 0 : i32
    %c0_i32_0 = arith.constant 0 : i32
    %c0_i32_1 = arith.constant 0 : i32
    return %arg1, %c0_i32, %c0_i32_0 : i32, i32, i32
  }
  func.func @transform_4(%arg0: i32, %arg1: i32) -> (i32, i32, i32) {
    %c0_i32 = arith.constant 0 : i32
    %c0_i32_0 = arith.constant 0 : i32
    return %arg1, %arg0, %c0_i32 : i32, i32, i32
  }
  func.func @transform_5(%arg0: i32, %arg1: i32) -> (i32, i32) {
    %c0_i32 = arith.constant 0 : i32
    %c0_i32_0 = arith.constant 0 : i32
    %c0_i32_1 = arith.constant 0 : i32
    return %c0_i32, %c0_i32_0 : i32, i32
  }
  func.func @transform_6(%arg0: i32, %arg1: i32) -> (i32, i32) {
    %c0_i32 = arith.constant 0 : i32
    %c0_i32_0 = arith.constant 0 : i32
    return %arg0, %c0_i32 : i32, i32
  }
}

</mosaic_0001>

<bundles_post_ra>
// kernel: tpu_custom_call.1
= control target key start
LH: loop header
LB: loop body
LE: loop exit
PB: predicated region body
PF: predicated region fallthrough
CT: control target
= control target key end

     0   :  { %s1530_s0 = inlined_call_operand.hbm [shape: f32[16,128], index: 0, kind: input, shape index: {}]   ;;  %s1531_s1 = inlined_call_operand.hbm [shape: f32[16,128], index: 1, kind: input, shape index: {}]   ;;  %s1532_s2 = inlined_call_operand.hbm [shape: f32[128,128], index: 2, kind: input, shape index: {}]   ;;  %s1533_s3 = inlined_call_operand.hbm [shape: f32[4,128,128], index: 3, kind: input, shape index: {}]   ;;  %s1534_s4 = inlined_call_operand.hbm [shape: f32[4,16,16], index: 4, kind: input, shape index: {}]   ;;  %s1535_s5 = inlined_call_operand.vmem [shape: f32[1,128], index: 5, kind: input, shape index: {}]   ;;  %s1536_s6 = inlined_call_operand.hbm [shape: f32[16,128], index: 6, kind: output, shape index: {}]  }
   0x1   :  { %1544 = sst [smem:[#allocation18_spill]] %s1531_s1 }
   0x2   :  { %1545 = sst [smem:[#allocation19_spill]] %s1533_s3 }
   0x3   :  { %11 = vsyncpa [#allocation4], 0 }
   0x4   :  { %12 = vsyncpa [#allocation7], 0 }
   0x5   :  { %13 = vsyncpa [#allocation10], 0 }
   0x6   :  { %15 = vsyncpa [#allocation10 + $0x1], 0 }
   0x7   :  { %16 = vsyncpa [#allocation5], 0  ;;  %s1314_s21 = smov 0   ;;  %s1316_s22 = smov 0  }
   0x8   :  { %s1318_s23 = smov 0   ;;  %s1320_s24 = smov 0  }
   0x9   :  { %s1322_s25 = smov 0   ;;  %s1324_s26 = smov 0  }
   0xa LB: > { %s1343_s27 = sadd.s32 4294967295, %s1267_s26   ;;  %p122_p0 = scmp.ne.s32.totalorder %s1251_s22, %s1247_s21  ;;  %s1267_s26 = sphi %s1324_s26, %s22_s26   ;;  %s1263_s25 = sphi %s1322_s25, %s1565_s25   ;;  %s1259_s24 = sphi %s1320_s24, %s1564_s24   ;;  %s1255_s23 = sphi %s1318_s23, %s1563_s23   ;;  %s1251_s22 = sphi %s1316_s22, %s1562_s22   ;;  %s1247_s21 = sphi %s1314_s21, %s1561_s21  }
   0xb   : > { %p1542_p1 = scmp.eq.s32.totalorder %s1343_s27, 0  ;;  %p800_p2 = scmp.ge.s32.totalorder %s1267_s26, 1 }
   0xc   : > { %p208_p3 = scmp.lt.s32.totalorder %s1267_s26, 5  ;;  %s1269_s30 = smov [#allocation6]  }
   0xd   : > { %p1351_p4 = por %p1542_p1, %p122_p0  ;;  %s236_s7 = sshll.u32 %s1269_s30, 4  ;;  %s237_s7 = int_to_ptr.vmem [resolvable:$true] %s236_s7 }
   0xe   : > { %p1355_p5 = pnand %p800_p2, %p208_p3  ;;  %s31_s9 = sadd.s32 1, %s1263_s25 }
   0xf   : > { %s1058_s10 = scalar_lea.vmem %s237_s7, 256  ;;  %p1066_p12 = scmp.lt.s32.totalorder %s237_s7, %s237_s7 }
  0x10   : > { %p965_p6 = pneg %p1355_p5  ;;  %p1059_p9 = scmp.ne.s32.totalorder %s237_s7, %s1058_s10 }
  0x11   : > { %p1067_p13 = scmp.lt.s32.totalorder %s1058_s10, %s1058_s10 }
  0x12   : > { %p1363_p7 = pnand %p965_p6, %p1542_p1 }
  0x13   : > { %p1068_p0 = por %p1067_p13, %p1066_p12 }
  0x14   : > { %p1049_p8 = pneg %p1363_p7 }
  0x16   : > { %p1061_p10 = pnand %p1059_p9, %p1049_p8 }
  0x18   : > { %p1062_p11 = pneg %p1061_p10 }
  0x1a   : > { %p1069_p2 = pnand %p1068_p0, %p1062_p11 }
  0x1c   : > { %1072 = shalt.err (!%p1069_p2)
}
  0x1d   : > { %s1537_s11 = smov 128   ;;  %s1539_s12 = smov 8  }
  0x1e   : > { %s1549_s1 = sld [smem:[#allocation18_spill]]  ;;  %p32_p3 = scmp.ge.s32.totalorder %s31_s9, 4 }
  0x1f   : > { %s109_s15 = sadd.s32 1, %s1255_s23  ;;  %p116_p6 = scmp.ne.s32.totalorder %s1255_s23, %s1251_s22 }
  0x20   : > { %p117_p9 = scmp.eq.s32.totalorder %s1267_s26, 0  ;;  %s1567_s9 = smov (%p32_p3, %s31_s9), 0 }
  0x21   : > { %1550 = sst [smem:[#allocation17_spill]] %s1567_s9  ;;  %p985_p11 = scmp.lt.s32.totalorder %s1267_s26, 4 }
  0x22   : > { %p118_p10 = por %p117_p9, %p116_p6  ;;  %s106_s16 = ssub.s32 %s1263_s25, %s1567_s9 }
  0x23   : > { %s266_s17 = sand.u32 1, %s1267_s26   ;;  %p107_p12 = scmp.eq.s32.totalorder %s106_s16, 0 }
  0x24   : > { %971 = dma.hbm_to_vmem [thread:$0]  (!%p1363_p7), %s1549_s1, 256, %s237_s7, [#allocation7], %s1537_s11, %s1537_s11, %s1539_s12  }
  0x25   : > { %s268_s18 = sand.u32 1, %s1255_s23   ;;  %s826_s19 = sshll.u32 %s1263_s25, 11 }
  0x26   : > { %s1394_s20 = scalar_select %p107_p12, %s1255_s23, %s109_s15  }
  0x27   : > { %s805_s21 = sshll.u32 %s268_s18, 7  ;;  %s1551_s3 = sld [smem:[#allocation19_spill]] }
  0x28   : > { %p1399_p13 = pnand %p985_p11, %p118_p10  ;;  %s270_s14 = scalar_lea.vmem [#allocation9], %s805_s21 }
  0x29   : > { %s277_s11 = sshll.u32 %s270_s14, 4  ;;  %s808_s12 = sshll.u32 %s268_s18, 4  ;;  %s278_s11 = int_to_ptr.vmem [resolvable:$true] %s277_s11 }
  0x2a   : > { %s1403_s16 = scalar_lea.sflag [#allocation10], %s266_s17  ;;  %p1543_p0 = pneg %p1399_p13 }
  0x2b   : > { %s1086_s15 = scalar_lea.vmem %s278_s11, 2048 }
  0x2c   : > { %p1087_p2 = scmp.ne.s32.totalorder %s278_s11, %s1086_s15 }
  0x2d   : > { %s276_s7 = scalar_lea.hbm %s1551_s3, %s826_s19  ;;  %s1272_s19 = smov [#allocation9]  }
  0x2e   : > { %p1089_p3 = pnand %p1087_p2, %p1543_p0  ;;  %s1091_s30 = sshll.u32 %s1272_s19, 4  ;;  %s1092_s30 = int_to_ptr.vmem [resolvable:$false] %s1091_s30 }
  0x2f   : > { %s1093_s10 = scalar_lea.vmem %s1092_s30, 4096  ;;  %p1094_p9 = scmp.lt.s32.totalorder %s278_s11, %s1092_s30 }
  0x30   : > { %p1090_p6 = pneg %p1089_p3  ;;  %p1095_p10 = scmp.lt.s32.totalorder %s1093_s10, %s1086_s15 }
  0x32   : > { %p1096_p11 = por %p1095_p10, %p1094_p9 }
  0x34   : > { %p1097_p12 = pnand %p1096_p11, %p1090_p6 }
  0x36   : > { %1100 = shalt.err (!%p1097_p12)
}
  0x37   : > { %s1553_s17 = smov 8   ;;  %s1554_s18 = smov 128  }
  0x38   : > { %978 = dma.hbm_to_vmem [thread:$0]  (!%p1399_p13), %s276_s7, 2048, %s278_s11, %s1403_s16, %s1554_s18, %s1554_s18, %s1553_s17  }
  0x39   : > { %s291_s21 = scalar_lea.vmem [#allocation11], %s808_s12  ;;  %s1273_s1 = smov [#allocation3]  }
  0x3a   : > { %s1416_s14 = sshll.u32 %s291_s21, 4  ;;  %s220_s19 = sshll.u32 %s1273_s1, 4  ;;  %s221_s19 = int_to_ptr.vmem [resolvable:$true] %s220_s19  ;;  %s301_s14 = int_to_ptr.vmem [resolvable:$true] %s1416_s14 }
  0x3b   : > { %s1274_s3 = smov [#allocation8]   ;;  %s1112_s15 = scalar_lea.vmem %s221_s19, 256 }
  0x3c   : > { %s249_s9 = sshll.u32 %s1274_s3, 4  ;;  %p1113_p2 = scmp.ne.s32.totalorder %s221_s19, %s1112_s15  ;;  %s250_s9 = int_to_ptr.vmem [resolvable:$true] %s249_s9 }
  0x3d   : > { %p1120_p9 = scmp.lt.s32.totalorder %s221_s19, %s221_s19  ;;  %p1121_p10 = scmp.lt.s32.totalorder %s1112_s15, %s1112_s15 }
  0x3e   : > { %p1115_p3 = pnand %p1113_p2, %p1049_p8 }
  0x3f   : > { %p1122_p11 = por %p1121_p10, %p1120_p9 }
  0x40   : > { %p1116_p6 = pneg %p1115_p3 }
  0x42   : > { %p1123_p12 = pnand %p1122_p11, %p1116_p6 }
  0x44   : > { %1126 = shalt.err (!%p1123_p12)
}
  0x45   : > { %968 = dma.hbm_to_vmem [thread:$0]  (!%p1363_p7), %s1530_s0, 256, %s221_s19, [#allocation4], %s1554_s18, %s1554_s18, %s1553_s17  }
  0x46   : > { %s1138_s11 = scalar_lea.vmem %s250_s9, 2048  ;;  %p1146_p0 = scmp.lt.s32.totalorder %s250_s9, %s250_s9 }
  0x47   : > { %p1139_p1 = scmp.ne.s32.totalorder %s250_s9, %s1138_s11  ;;  %p1147_p9 = scmp.lt.s32.totalorder %s1138_s11, %s1138_s11 }
  0x49   : > { %p1141_p2 = pnand %p1139_p1, %p1049_p8  ;;  %p1148_p6 = por %p1147_p9, %p1146_p0 }
  0x4b   : > { %p1142_p3 = pneg %p1141_p2 }
  0x4d   : > { %p1149_p10 = pnand %p1148_p6, %p1142_p3 }
  0x4f   : > { %1152 = shalt.err (!%p1149_p10)
}
  0x50   : > { %974 = dma.hbm_to_vmem [thread:$0]  (!%p1363_p7), %s1532_s2, 2048, %s250_s9, [#allocation7], %s1554_s18, %s1554_s18, %s1553_s17  }
  0x51   : > { %s827_s30 = sshll.u32 %s1263_s25, 8  ;;  %s1166_s15 = scalar_lea.vmem %s301_s14, 256 }
  0x52   : > { %s299_s19 = scalar_lea.hbm %s1534_s4, %s827_s30  ;;  %p1167_p1 = scmp.ne.s32.totalorder %s301_s14, %s1166_s15 }
  0x53   : > { %p1555_p8 = pneg %p1399_p13  ;;  %s1275_s8 = smov [#allocation11]  }
  0x54   : > { %s1171_s1 = sshll.u32 %s1275_s8, 4  ;;  %s1172_s1 = int_to_ptr.vmem [resolvable:$false] %s1171_s1 }
  0x55   : > { %p1169_p0 = pnand %p1167_p1, %p1555_p8  ;;  %s1173_s3 = scalar_lea.vmem %s1172_s1, 512 }
  0x56   : > { %p1174_p12 = scmp.lt.s32.totalorder %s301_s14, %s1172_s1  ;;  %p1175_p2 = scmp.lt.s32.totalorder %s1173_s3, %s1166_s15 }
  0x57   : > { %p1170_p11 = pneg %p1169_p0 }
  0x58   : > { %p1176_p3 = por %p1175_p2, %p1174_p12 }
  0x5a   : > { %p1177_p7 = pnand %p1176_p3, %p1170_p11 }
  0x5c   : > { %1180 = shalt.err (!%p1177_p7)
}
  0x5d   : > { %981 = dma.hbm_to_vmem [thread:$0]  (!%p1399_p13), %s299_s19, 256, %s301_s14, %s1403_s16, %s1554_s18, %s1554_s18, %s1553_s17  }
  0x5e   : > { %312 = sbr.rel (%p1355_p5) target bundleno = 800 (0x320), region = 44  ;;  %p1556_p9 = scmp.eq.s32.totalorder (!%p1355_p5), %s1343_s27, 0 }
  0x63   : > { %1230 = dma.done.wait (%p1556_p9), [#allocation4], 256   ;;  %p1557_p6 = pmov %p1556_p9 }
  0x65   : > { %1232 = vsyncadd (%p1557_p6), [#allocation4], 4294967040  ;;  %p1558_p10 = pmov %p1557_p6 }
  0x66   : > { %p1559_p1 = pmov %p1557_p6 }
  0x67   : > { %1234 = dma.done.wait (%p1558_p10), [#allocation7], 2304  }
  0x68   : > { %1236 = vsyncadd (%p1559_p1), [#allocation7], 4294964992  ;;  %s326_s9 = sand.u32 1, %s1343_s27   ;;  %s328_s13 = sand.u32 1, %s1251_s22  }
  0x69   : > { %s815_s16 = sshll.u32 %s328_s13, 7  ;;  %s327_s29 = scalar_lea.sflag [#allocation10], %s326_s9 }
  0x6a   : > { %s1466_s17 = scalar_lea.vmem [#allocation9], %s815_s16 }
  0x6b   : > { %1238 = dma.done.wait (%p1351_p4), %s327_s29, 2304  }
  0x6c   : > { %1240 = vsyncadd (%p1351_p4), %s327_s29, 4294964992  ;;  %s1472_s18 = sshll.u32 %s328_s13, 4  ;;  %p817_p5 = scmp.ne.s32.totalorder %s1259_s24, 0 }
  0x6d   : > { %s339_s14 = scalar_lea.vmem [#allocation11], %s1472_s18 }
  0x6e   : > { %374 = sbr.rel (%p817_p5) target bundleno = 346 (0x15a), region = 68 }
  0x73   : > { %v392_v0 = vld [vmem:[#allocation8 + $0x78] sm:$0xff]  ;;  %v391_v1 = vld [vmem:[#allocation8 + $0x70] sm:$0xff]  ;;  %v390_v2 = vld [vmem:[#allocation8 + $0x68] sm:$0xff] }
  0x74   : > { %868 = vmatprep.subr.mxu0 %v392_v0  ;;  %v389_v3 = vld [vmem:[#allocation8 + $0x60] sm:$0xff]  ;;  %v375_v4 = vld [vmem:[#allocation6] sm:$0xff]  ;;  %v388_v5 = vld [vmem:[#allocation8 + $0x58] sm:$0xff] }
  0x75   : > { %869 = vmatpush3.msra.mxu0 %v392_v0  ;;  %900 = vmatprep.mubr.f32.mxu0 %v375_v4  ;;  %v387_v6 = vld [vmem:[#allocation8 + $0x50] sm:$0xff]  ;;  %v386_v7 = vld [vmem:[#allocation8 + $0x48] sm:$0xff]  ;;  %v385_v8 = vld [vmem:[#allocation8 + $0x40] sm:$0xff] }
  0x76   : > { %870 = vmatprep.subr.mxu0 %v391_v1  ;;  %v384_v9 = vld [vmem:[#allocation8 + $0x38] sm:$0xff]  ;;  %v383_v10 = vld [vmem:[#allocation8 + $0x30] sm:$0xff]  ;;  %v382_v11 = vld [vmem:[#allocation8 + $0x28] sm:$0xff] }
  0x77   : > { %871 = vmatpush3.msra.mxu0 %v391_v1  ;;  %v381_v12 = vld [vmem:[#allocation8 + $0x20] sm:$0xff]  ;;  %v380_v13 = vld [vmem:[#allocation8 + $0x18] sm:$0xff]  ;;  %v379_v14 = vld [vmem:[#allocation8 + $0x10] sm:$0xff] }
  0x78   : > { %872 = vmatprep.subr.mxu0 %v390_v2  ;;  %v378_v15 = vld [vmem:[#allocation8 + $0x8] sm:$0xff]  ;;  %v377_v16 = vld [vmem:[#allocation8] sm:$0xff]  ;;  %v376_v17 = vld [vmem:[#allocation6 + $0x8] sm:$0xff] }
  0x79   : > { %873 = vmatpush3.msra.mxu0 %v390_v2  ;;  %v818_v18 = vld [vmem:[%s1535_s5] ss:$0 sm:$0xff] }
  0x7a   : > { %874 = vmatprep.subr.mxu0 %v389_v3 }
  0x7b   : > { %875 = vmatpush3.msra.mxu0 %v389_v3 }
  0x7c   : > { %876 = vmatprep.subr.mxu0 %v388_v5 }
  0x7d   : > { %877 = vmatpush3.msra.mxu0 %v388_v5 }
  0x7e   : > { %878 = vmatprep.subr.mxu0 %v387_v6 }
  0x7f   : > { %879 = vmatpush3.msra.mxu0 %v387_v6 }
  0x80   : > { %880 = vmatprep.subr.mxu0 %v386_v7 }
  0x81   : > { %881 = vmatpush3.msra.mxu0 %v386_v7 }
  0x82   : > { %882 = vmatprep.subr.mxu0 %v385_v8 }
  0x83   : > { %883 = vmatpush3.msra.mxu0 %v385_v8 }
  0x84   : > { %884 = vmatprep.subr.mxu0 %v384_v9 }
  0x85   : > { %885 = vmatpush3.msra.mxu0 %v384_v9 }
  0x86   : > { %886 = vmatprep.subr.mxu0 %v383_v10 }
  0x87   : > { %887 = vmatpush3.msra.mxu0 %v383_v10 }
  0x88   : > { %888 = vmatprep.subr.mxu0 %v382_v11 }
  0x89   : > { %889 = vmatpush3.msra.mxu0 %v382_v11 }
  0x8a   : > { %890 = vmatprep.subr.mxu0 %v381_v12 }
  0x8b   : > { %891 = vmatpush3.msra.mxu0 %v381_v12 }
  0x8c   : > { %892 = vmatprep.subr.mxu0 %v380_v13 }
  0x8d   : > { %893 = vmatpush3.msra.mxu0 %v380_v13 }
  0x8e   : > { %894 = vmatprep.subr.mxu0 %v379_v14 }
  0x8f   : > { %895 = vmatpush3.msra.mxu0 %v379_v14 }
  0x90   : > { %896 = vmatprep.subr.mxu0 %v378_v15 }
  0x91   : > { %897 = vmatpush3.msra.mxu0 %v378_v15 }
  0x92   : > { %898 = vmatprep.subr.mxu0 %v377_v16 }
  0x93   : > { %899 = vmatpush3.msra.mxu0 %v377_v16 }
  0x94   : > { %901 = vmatmul.mubr.f32.vlgmr.msra.gmra.mxu0 %v376_v17 }
 0x154   : > { %v902_v19 = vpop.f32.mrf.mxu0 }
 0x155   : > { %v472_v20 = vadd.f32 %v902_v19, %v818_v18 }
 0x156   : > { %v466_v21 = vpop.f32.mrf.mxu0 }
 0x157   : > { %476 = vst [vmem:[#allocation2 + $0x8] sm:$0xff] %v472_v20  ;;  %v467_v22 = vadd.f32 %v818_v18, %v466_v21 }
 0x159   : > { %475 = vst [vmem:[#allocation2] sm:$0xff] %v467_v22 }
 0x15a PF: > { %v494_v23 = vld [vmem:[%s1466_s17 + $0x78] sm:$0xff]  ;;  %v493_v24 = vld [vmem:[%s1466_s17 + $0x70] sm:$0xff]  ;;  %v492_v25 = vld [vmem:[%s1466_s17 + $0x68] sm:$0xff]  ;;  %vm574_vm0 = vcmask 130048   ;;  %p821_p4 = scmp.ne.s32.totalorder %s1259_s24, 3 }
 0x15b   : > { %903 = vmatprep.subr.mxu0 %v494_v23  ;;  %v491_v26 = vld [vmem:[%s1466_s17 + $0x60] sm:$0xff]  ;;  %v490_v28 = vld [vmem:[%s1466_s17 + $0x58] sm:$0xff]  ;;  %v489_v29 = vld [vmem:[%s1466_s17 + $0x50] sm:$0xff] }
 0x15c   : > { %904 = vmatpush3.msra.mxu0 %v494_v23  ;;  %v477_v27 = vld [vmem:[#allocation3] sm:$0xff]  ;;  %v488_v30 = vld [vmem:[%s1466_s17 + $0x48] sm:$0xff]  ;;  %v486_v32 = vld [vmem:[%s1466_s17 + $0x38] sm:$0xff] }
 0x15d   : > { %905 = vmatprep.subr.mxu0 %v493_v24  ;;  %935 = vmatprep.mubr.f32.mxu0 %v477_v27  ;;  %v487_v31 = vld [vmem:[%s1466_s17 + $0x40] sm:$0xff]  ;;  %v485_v33 = vld [vmem:[%s1466_s17 + $0x30] sm:$0xff]  ;;  %v484_v34 = vld [vmem:[%s1466_s17 + $0x28] sm:$0xff] }
 0x15e   : > { %906 = vmatpush3.msra.mxu0 %v493_v24  ;;  %v483_v35 = vld [vmem:[%s1466_s17 + $0x20] sm:$0xff]  ;;  %v482_v36 = vld [vmem:[%s1466_s17 + $0x18] sm:$0xff]  ;;  %v481_v37 = vld [vmem:[%s1466_s17 + $0x10] sm:$0xff] }
 0x15f   : > { %907 = vmatprep.subr.mxu0 %v492_v25  ;;  %v480_v38 = vld [vmem:[%s1466_s17 + $0x8] sm:$0xff]  ;;  %v479_v39 = vld [vmem:[%s1466_s17] sm:$0xff]  ;;  %v571_v45 = vld [vmem:[#allocation2 + $0x8] sm:$0xff] }
 0x160   : > { %908 = vmatpush3.msra.mxu0 %v492_v25  ;;  %v478_v40 = vld [vmem:[#allocation3 + $0x8] sm:$0xff]  ;;  %v572_v41 = vld [vmem:[%s339_s14] sm:$0xff] }
 0x161   : > { %909 = vmatprep.subr.mxu0 %v491_v26  ;;  %942 = vmatprep.mubr.msk.f32.mxu1 %vm574_vm0, %v572_v41  ;;  %v573_v44 = vld [vmem:[%s339_s14 + $0x8] sm:$0xff]  ;;  %v570_v47 = vld [vmem:[#allocation2] sm:$0xff] }
 0x162   : > { %910 = vmatpush3.msra.mxu0 %v491_v26 }
 0x163   : > { %911 = vmatprep.subr.mxu0 %v490_v28 }
 0x164   : > { %912 = vmatpush3.msra.mxu0 %v490_v28 }
 0x165   : > { %913 = vmatprep.subr.mxu0 %v489_v29 }
 0x166   : > { %914 = vmatpush3.msra.mxu0 %v489_v29 }
 0x167   : > { %915 = vmatprep.subr.mxu0 %v488_v30 }
 0x168   : > { %916 = vmatpush3.msra.mxu0 %v488_v30 }
 0x169   : > { %917 = vmatprep.subr.mxu0 %v487_v31 }
 0x16a   : > { %918 = vmatpush3.msra.mxu0 %v487_v31 }
 0x16b   : > { %919 = vmatprep.subr.mxu0 %v486_v32 }
 0x16c   : > { %920 = vmatpush3.msra.mxu0 %v486_v32 }
 0x16d   : > { %921 = vmatprep.subr.mxu0 %v485_v33 }
 0x16e   : > { %922 = vmatpush3.msra.mxu0 %v485_v33 }
 0x16f   : > { %923 = vmatprep.subr.mxu0 %v484_v34 }
 0x170   : > { %924 = vmatpush3.msra.mxu0 %v484_v34 }
 0x171   : > { %925 = vmatprep.subr.mxu0 %v483_v35 }
 0x172   : > { %926 = vmatpush3.msra.mxu0 %v483_v35 }
 0x173   : > { %927 = vmatprep.subr.mxu0 %v482_v36 }
 0x174   : > { %928 = vmatpush3.msra.mxu0 %v482_v36 }
 0x175   : > { %929 = vmatprep.subr.mxu0 %v481_v37 }
 0x176   : > { %930 = vmatpush3.msra.mxu0 %v481_v37 }
 0x177   : > { %931 = vmatprep.subr.mxu0 %v480_v38 }
 0x178   : > { %932 = vmatpush3.msra.mxu0 %v480_v38 }
 0x179   : > { %933 = vmatprep.subr.mxu0 %v479_v39 }
 0x17a   : > { %934 = vmatpush3.msra.mxu0 %v479_v39 }
 0x17b   : > { %936 = vmatmul.mubr.f32.vlgmr.msra.gmra.mxu0 %v478_v40 }
 0x23b   : > { %v937_v42 = vpop.f32.mrf.mxu0 }
 0x23c   : > { %938 = vmatprep.subr.mxu1 %v937_v42 }
 0x23d   : > { %v561_v43 = vpop.f32.mrf.mxu0  ;;  %939 = vmatpush3.msra.mxu1 %v937_v42 }
 0x23e   : > { %940 = vmatprep.subr.mxu1 %v561_v43 }
 0x23f   : > { %941 = vmatpush3.msra.mxu1 %v561_v43 }
 0x240   : > { %943 = vmatmul.mubr.msk.f32.vlgmr.msra.gmra.mxu1 %vm574_vm0, %v573_v44 }
 0x300   : > { %v944_v46 = vpop.f32.mrf.mxu1 }
 0x301   : > { %v657_v48 = vadd.f32 %v944_v46, %v571_v45  ;;  %663 = sbr.rel (%p821_p4) target bundleno = 784 (0x310), region = 72 }
 0x302   : > { %v647_v49 = vpop.f32.mrf.mxu1 }
 0x303   : > { %659 = vst [vmem:[#allocation2 + $0x8] sm:$0xff] %v657_v48  ;;  %v656_v50 = vadd.f32 %v647_v49, %v570_v47 }
 0x305   : > { %658 = vst [vmem:[#allocation2] sm:$0xff] %v656_v50 }
 0x30a   : > { %v665_v52 = vld [vmem:[#allocation2 + $0x8] sm:$0xff] }
 0x30b   : > { %v667_v54 = vmax.f32 %v665_v52, 0.0 }
 0x30c   : > { %v664_v51 = vld [vmem:[#allocation2] sm:$0xff] }
 0x30d   : > { %v666_v53 = vmax.f32 %v664_v51, 0.0  ;;  %669 = vst [vmem:[#allocation12 + $0x8] sm:$0xff] %v667_v54 }
 0x30f   : > { %668 = vst [vmem:[#allocation12] sm:$0xff] %v666_v53 }
 0x310 PF: > { %p989_p13 = scmp.eq.s32.totalorder %s1343_s27, 3  ;;  %s1276_s12 = smov [#allocation12]  }
 0x311   : > { %s679_s7 = sshll.u32 %s1276_s12, 4  ;;  %s680_s7 = int_to_ptr.vmem [resolvable:$true] %s679_s7 }
 0x312   : > { %s1181_s30 = scalar_lea.vmem %s680_s7, 256  ;;  %p1188_p12 = scmp.lt.s32.totalorder %s680_s7, %s680_s7 }
 0x313   : > { %p1182_p8 = scmp.ne.s32.totalorder %s680_s7, %s1181_s30  ;;  %p1189_p2 = scmp.lt.s32.totalorder %s1181_s30, %s1181_s30 }
 0x315   : > { %p1183_p0 = pnand %p1182_p8, %p989_p13  ;;  %p1190_p3 = por %p1189_p2, %p1188_p12 }
 0x317   : > { %p1184_p11 = pneg %p1183_p0 }
 0x319   : > { %p1191_p7 = pnand %p1190_p3, %p1184_p11 }
 0x31b   : > { %1194 = shalt.err (!%p1191_p7)
}
 0x31c   : > { %s1277_s24 = smov 128   ;;  %s1278_s10 = smov 8  }
 0x31d   : > { %962 = dma.vmem_to_hbm [thread:$0]  (%p989_p13), %s680_s7, 256, %s1536_s6, [#allocation5], %s1277_s24, %s1277_s24, %s1278_s10  }
 0x31e   : > { %1242 = dma.done.wait (%p989_p13), [#allocation5], 256  }
 0x31f   : > { %1244 = vsyncadd (%p989_p13), [#allocation5], 4294967040 }
 0x320 PF: > { %s22_s26 = sadd.s32 1, %s1267_s26   ;;  %s1560_s15 = sld [smem:[#allocation17_spill]] }
 0x321   : > { %p19_p9 = scmp.ge.s32.totalorder %s22_s26, 6   ;;  %s1561_s21 = smov %s1251_s22 }
 0x322   : > { %s1562_s22 = smov %s1255_s23  ;;  %s1563_s23 = smov %s1394_s20 }
 0x323   : > { %s1564_s24 = smov %s1263_s25  ;;  %21 = sbr.rel (!%p19_p9) target bundleno = 10 (0xa), region = 115 }
 0x326   : > { %s1565_s25 = smov %s1560_s15 }
 0x328   :  { %695 = vsyncpa [#allocation4], 1 }
 0x329   :  { %697 = vsyncpa [#allocation4 + $0x1], 1 }
 0x32a   :  { %698 = vsyncpa [#allocation7], 1 }
 0x32b   :  { %699 = vsyncpa [#allocation10], 1 }
 0x32c   :  { %701 = vsyncpa [#allocation10 + $0x1], 1 }
 0x32d   :  { %702 = vsyncpa [#allocation5], 1 }
 0x32e   :  { %704 = vsyncpa [#allocation5 + $0x1], 1 }

</bundles_post_ra>
